<compile_context>
chip_gen: v7x
topology: tpu7x:2x2x1
jax: 0.10.0
libtpu: 0.0.40
codegen_flags: <defaults>
</compile_context>

<pallas_src>
import jax
import jax.numpy as jnp
from jax.experimental import pallas as pl
from jax.experimental.pallas import tpu as pltpu


# ----------------------------------------------------------------------------
# small helpers
# ----------------------------------------------------------------------------
def _round_up(x, m):
    return ((x + m - 1) // m) * m


def _choose_row_tile(n_pad, tile_m):
    """Dst-row tile: multiple of 8, divides n_pad, <= tile_m, >=2 steps if possible."""
    tm = min(max(8, (tile_m // 8) * 8), n_pad)
    while n_pad % tm != 0:
        tm -= 8
    if n_pad // tm < 2:
        half = n_pad // 2
        if half >= 8 and half % 8 == 0 and n_pad % half == 0:
            tm = half
    return tm


# ----------------------------------------------------------------------------
# Input projection kernel (HeteroLinearLayer)
# ----------------------------------------------------------------------------
def _linear_kernel(x_ref, w_ref, b_ref, o_ref):
    y = jnp.dot(x_ref[...].astype(w_ref.dtype), w_ref[...],
                preferred_element_type=jnp.float32) + b_ref[...]
    o_ref[...] = y.astype(o_ref.dtype)


def linear_pallas(x, w, b, tm, out_dtype=jnp.bfloat16):
    n, d_in = x.shape
    d_out = w.shape[1]
    assert n % tm == 0
    cost = pl.CostEstimate(
        flops=int(2 * n * d_in * d_out),
        transcendentals=0,
        bytes_accessed=int(x.size * x.dtype.itemsize + w.size * w.dtype.itemsize
                           + d_out * 4 + n * d_out * jnp.dtype(out_dtype).itemsize),
    )
    return pl.pallas_call(
        _linear_kernel,
        out_shape=jax.ShapeDtypeStruct((n, d_out), out_dtype),
        grid=(n // tm,),
        in_specs=[
            pl.BlockSpec((tm, d_in), lambda i: (i, 0)),
            pl.BlockSpec((d_in, d_out), lambda i: (0, 0)),
            pl.BlockSpec((1, d_out), lambda i: (0, 0)),
        ],
        out_specs=pl.BlockSpec((tm, d_out), lambda i: (i, 0)),
        compiler_params=pltpu.CompilerParams(dimension_semantics=("parallel",)),
        cost_estimate=cost,
    )(x, w, b.reshape(1, d_out))


# ----------------------------------------------------------------------------
# Fused MECCH layer kernel: context encode + 'conv' fusion + linear + LN/ReLU
# ----------------------------------------------------------------------------
def _make_fused_layer_kernel(n_mp, apply_ln, apply_relu, eps):
    def kernel(*refs):
        # layout: adj_0..adj_{M-1}, hsrc_0.., inv_0.., hdst, conv, w, b,
        #         [ln_g, ln_b], out, acc_scratch
        adj_refs = refs[0:n_mp]
        hsrc_refs = refs[n_mp:2 * n_mp]
        inv_refs = refs[2 * n_mp:3 * n_mp]
        idx = 3 * n_mp
        hdst_ref, conv_ref, w_ref, b_ref = refs[idx:idx + 4]
        idx += 4
        if apply_ln:
            g_ref, bln_ref = refs[idx:idx + 2]
            idx += 2
        o_ref = refs[idx]
        acc_ref = refs[idx + 1]

        k = pl.program_id(1)

        @pl.when(k == 0)
        def _init():
            acc_ref[...] = jnp.zeros_like(acc_ref)

        # K-tiled neighbor aggregation; scale is linear so it can be applied
        # per-partial:  acc += (adj_k @ hsrc_k) * (inv_m * conv[m]).
        for m in range(n_mp):
            part = jnp.dot(adj_refs[m][...], hsrc_refs[m][...],
                           preferred_element_type=jnp.float32)
            acc_ref[...] += part * (inv_refs[m][...] * conv_ref[m:m + 1, :])

        @pl.when(k == pl.num_programs(1) - 1)
        def _finalize():
            h_dst = hdst_ref[...].astype(jnp.float32)
            fused = acc_ref[...]
            for m in range(n_mp):
                fused = fused + h_dst * (inv_refs[m][...] * conv_ref[m:m + 1, :])
            out = jnp.dot(fused.astype(w_ref.dtype), w_ref[...],
                          preferred_element_type=jnp.float32) + b_ref[...]
            if apply_ln:
                mean = jnp.mean(out, axis=-1, keepdims=True)
                ex2 = jnp.mean(out * out, axis=-1, keepdims=True)
                var = ex2 - mean * mean           # single-pass variance
                out = (out - mean) * jax.lax.rsqrt(var + eps) * g_ref[...] + bln_ref[...]
            if apply_relu:
                out = jnp.maximum(out, 0.0)
            o_ref[...] = out.astype(o_ref.dtype)

    return kernel


def fused_mecch_layer_pallas(adjs_list, hsrc_list, inv_list, h_dst, conv, w, b,
                             ln_g=None, ln_b=None, apply_relu=False, eps=1e-5,
                             tm=256, tk=512, out_dtype=jnp.bfloat16):
    """One MECCHLayer step for a single destination node type, fully fused."""
    n_mp = len(adjs_list)
    n_pad, d = h_dst.shape
    d_out = w.shape[1]
    apply_ln = ln_g is not None
    assert n_pad % tm == 0 and n_pad % tk == 0
    grid = (n_pad // tm, n_pad // tk)

    in_specs, inputs = [], []
    for a in adjs_list:
        in_specs.append(pl.BlockSpec((tm, tk), lambda i, k: (i, k)))
        inputs.append(a)
    for hs in hsrc_list:
        in_specs.append(pl.BlockSpec((tk, d), lambda i, k: (k, 0)))
        inputs.append(hs)
    for iv in inv_list:
        in_specs.append(pl.BlockSpec((tm, 1), lambda i, k: (i, 0)))
        inputs.append(iv)
    in_specs.append(pl.BlockSpec((tm, d), lambda i, k: (i, 0)));       inputs.append(h_dst)
    in_specs.append(pl.BlockSpec((n_mp, d), lambda i, k: (0, 0)));     inputs.append(conv)
    in_specs.append(pl.BlockSpec((d, d_out), lambda i, k: (0, 0)));    inputs.append(w)
    in_specs.append(pl.BlockSpec((1, d_out), lambda i, k: (0, 0)));    inputs.append(b.reshape(1, d_out))
    if apply_ln:
        in_specs.append(pl.BlockSpec((1, d_out), lambda i, k: (0, 0))); inputs.append(ln_g.reshape(1, d_out))
        in_specs.append(pl.BlockSpec((1, d_out), lambda i, k: (0, 0))); inputs.append(ln_b.reshape(1, d_out))

    out_bytes = n_pad * d_out * jnp.dtype(out_dtype).itemsize
    cost = pl.CostEstimate(
        flops=int(2 * n_pad * n_pad * d * n_mp + 2 * n_pad * d * d_out),
        transcendentals=int(n_pad if apply_ln else 0),
        bytes_accessed=int(sum(int(x.size) * x.dtype.itemsize for x in inputs) + out_bytes),
    )

    kernel = _make_fused_layer_kernel(n_mp, apply_ln, apply_relu, eps)
    return pl.pallas_call(
        kernel,
        out_shape=jax.ShapeDtypeStruct((n_pad, d_out), out_dtype),
        grid=grid,
        in_specs=in_specs,
        out_specs=pl.BlockSpec((tm, d_out), lambda i, k: (i, 0)),
        scratch_shapes=[pltpu.VMEM((tm, d), jnp.float32)],
        compiler_params=pltpu.CompilerParams(
            dimension_semantics=("parallel", "arbitrary"),
            vmem_limit_bytes=48 * 1024 * 1024),
        cost_estimate=cost,
    )(*inputs)


# ----------------------------------------------------------------------------
# MECCH forward (glue in plain JAX, hot paths fused into Pallas kernels)
# ----------------------------------------------------------------------------
def mecch_forward(params, adjs, x_dict, metapaths_dict, n_nodes, n_layers,
                  tile_m=512, tile_k=512):
    # ----- one-time, layer-invariant graph preprocessing -----
    max_nodes = max(n_nodes.values())
    tk = min(max(128, (tile_k // 128) * 128), _round_up(max_nodes, 128))
    n_pad = _round_up(max_nodes, tk)
    tm = _choose_row_tile(n_pad, tile_m)

    adj_pad, inv = {}, {}
    for dst_nt, mps in metapaths_dict.items():
        for src_nt, ename in mps:
            a = adjs[ename].astype(jnp.float32)
            deg = jnp.sum(a, axis=1)                                   # exact degrees
            iv = jnp.ones((n_pad, 1), jnp.float32)
            iv = iv.at[: a.shape[0], 0].set(1.0 / (deg + 1.0))          # exact 1/(deg+1)
            inv[ename] = iv
            ap = jnp.zeros((n_pad, n_pad), jnp.bfloat16)               # 0/1 exact in bf16
            ap = ap.at[: a.shape[0], : a.shape[1]].set(a.astype(jnp.bfloat16))
            adj_pad[ename] = ap

    # HeteroLinearLayer input projection (all in_dims >= 0, so HeteroEmbedLayer unused).
    # TODO(synk): fold this projection into the layer-0 fused kernel to save one launch
    # and one HBM round trip of h per node type.
    h = {}
    for nt, x in x_dict.items():
        xp = jnp.zeros((n_pad, x.shape[1]), x.dtype).at[: x.shape[0]].set(x)
        h[nt] = linear_pallas(xp, params["lin"][nt]["w"], params["lin"][nt]["b"], tm)

    for l in range(n_layers):
        lp = params["layers"][l]
        last = l == n_layers - 1
        new_h = {}
        for dst_nt, mps in metapaths_dict.items():
            adjs_list = [adj_pad[ename] for _, ename in mps]
            inv_list = [inv[ename] for _, ename in mps]
            hsrc_list = [h[src_nt] for src_nt, _ in mps]
            new_h[dst_nt] = fused_mecch_layer_pallas(
                adjs_list, hsrc_list, inv_list, h[dst_nt],
                lp["conv"][dst_nt], lp["w"][dst_nt], lp["b"][dst_nt],
                ln_g=None if last else lp["ln_g"][dst_nt],
                ln_b=None if last else lp["ln_b"][dst_nt],
                apply_relu=not last,
                tm=tm, tk=tk,
                out_dtype=jnp.float32 if last else jnp.bfloat16,
            )
            # dropout: identity at inference time
        h = new_h

    return {nt: h[nt][: n_nodes[nt]] for nt in h}


# ----------------------------------------------------------------------------
# Deterministic parameter construction
# ----------------------------------------------------------------------------
def build_params(key, in_dim_dict, hidden_dim, out_dim, n_layers, metapaths_dict):
    params = {"lin": {}, "layers": []}
    for nt, d_in in in_dim_dict.items():
        key, k1, k2 = jax.random.split(key, 3)
        params["lin"][nt] = {
            # pre-transposed [d_in, hidden]; bf16 for the MXU feed path
            "w": (jax.random.normal(k1, (d_in, hidden_dim), jnp.float32) * 0.1).astype(jnp.bfloat16),
            "b": jax.random.normal(k2, (hidden_dim,), jnp.float32) * 0.1,
        }
    for l in range(n_layers):
        d_out = hidden_dim if l < n_layers - 1 else out_dim
        lp = {"conv": {}, "w": {}, "b": {}, "ln_g": {}, "ln_b": {}}
        for nt, mps in metapaths_dict.items():
            n_mp = len(mps)
            key, k1, k2 = jax.random.split(key, 3)
            lp["conv"][nt] = jnp.full((n_mp, hidden_dim), 1.0 / n_mp, jnp.float32)
            lp["w"][nt] = (jax.random.normal(k1, (hidden_dim, d_out), jnp.float32) * 0.1).astype(jnp.bfloat16)
            lp["b"][nt] = jax.random.normal(k2, (d_out,), jnp.float32) * 0.1
            lp["ln_g"][nt] = jnp.ones((d_out,), jnp.float32)
            lp["ln_b"][nt] = jnp.zeros((d_out,), jnp.float32)
        params["layers"].append(lp)
    return params


if __name__ == "__main__":
    key = jax.random.PRNGKey(0)

    # Heterogeneous graph: node types 'A' and 'B', 16 nodes each (src == dst set).
    n_nodes = {"A": 16, "B": 16}
    in_dim_dict = {"A": 12, "B": 20}
    hidden_dim = 256   # 256-wide: fills the 2x256x256 MXU on v6e/v7x (use 128 on v5e)
    out_dim = 128
    n_layers = 2

    # metapaths_dict[dst_ntype] = list of (src_ntype, edge_name)
    metapaths_dict = {
        "A": [("B", "B-A"), ("A", "A-A")],
        "B": [("A", "A-B")],
    }

    # Dense adjacency per metapath relation: [num_dst, num_src], 0/1.
    adjs = {}
    for dst_nt, mps in metapaths_dict.items():
        for src_nt, ename in mps:
            key, k = jax.random.split(key)
            adjs[ename] = jax.random.bernoulli(
                k, 0.4, (n_nodes[dst_nt], n_nodes[src_nt])
            ).astype(jnp.float32)

    # Node features.
    x_dict = {}
    for nt, d_in in in_dim_dict.items():
        key, k = jax.random.split(key)
        x_dict[nt] = jax.random.normal(k, (n_nodes[nt], d_in), jnp.float32)

    params = build_params(
        key, in_dim_dict, hidden_dim, out_dim, n_layers, metapaths_dict
    )

    out = mecch_forward(params, adjs, x_dict, metapaths_dict, n_nodes, n_layers)
    out = {nt: jax.block_until_ready(v) for nt, v in out.items()}

    assert out["A"].shape == (n_nodes["A"], out_dim)
    assert out["B"].shape == (n_nodes["B"], out_dim)
    assert all(bool(jnp.all(jnp.isfinite(v.astype(jnp.float32)))) for v in out.values())
    print("KERNEL_OK")
</pallas_src>

<mosaic_0001>
module attributes {stable_mosaic.version = 11 : i64} {
  func.func @_linear_kernel(%arg0: i32, %arg1: memref<64x12xf32, #tpu.memory_space<vmem>>, %arg2: memref<12x256xbf16, #tpu.memory_space<vmem>>, %arg3: memref<1x256xf32, #tpu.memory_space<vmem>>, %arg4: memref<64x256xbf16, #tpu.memory_space<vmem>>) attributes {dimension_semantics = [#tpu.dimension_semantics<parallel>], iteration_bounds = array<i64: 2>, scalar_prefetch = 0 : i64, scratch_operands = 0 : i64, tpu.core_type = #tpu.core_type<tc>, window_params = [{transform_indices = @transform_0, window_bounds = array<i64: 64, 12>}, {pipeline_mode = #tpu.pipeline_mode<synchronous>, transform_indices = @transform_1, window_bounds = array<i64: 12, 256>}, {pipeline_mode = #tpu.pipeline_mode<synchronous>, transform_indices = @transform_2, window_bounds = array<i64: 1, 256>}, {transform_indices = @transform_3, window_bounds = array<i64: 64, 256>}]} {
    %c0 = arith.constant 0 : index
    %c0_0 = arith.constant 0 : index
    %0 = vector.load %arg1[%c0, %c0_0] : memref<64x12xf32, #tpu.memory_space<vmem>>, vector<64x12xf32>
    %1 = arith.truncf %0 : vector<64x12xf32> to vector<64x12xbf16>
    %c0_1 = arith.constant 0 : index
    %c0_2 = arith.constant 0 : index
    %2 = vector.load %arg2[%c0_1, %c0_2] : memref<12x256xbf16, #tpu.memory_space<vmem>>, vector<12x256xbf16>
    %cst = arith.constant dense<0.000000e+00> : vector<64x256xf32>
    %3 = tpu.matmul %1, %2, %cst {dimension_numbers = #tpu.dot_dimension_numbers<[1], [0], [0], [1], [0, 0, 1, 1], [], []>} : vector<64x12xbf16>, vector<12x256xbf16>, vector<64x256xf32> -> vector<64x256xf32>
    %c0_3 = arith.constant 0 : index
    %c0_4 = arith.constant 0 : index
    %4 = vector.load %arg3[%c0_3, %c0_4] : memref<1x256xf32, #tpu.memory_space<vmem>>, vector<1x256xf32>
    %5 = vector.broadcast %4 : vector<1x256xf32> to vector<64x256xf32>
    %6 = arith.addf %3, %5 : vector<64x256xf32>
    %7 = arith.truncf %6 : vector<64x256xf32> to vector<64x256xbf16>
    %c0_5 = arith.constant 0 : index
    %c0_6 = arith.constant 0 : index
    %8 = vector.load %arg4[%c0_5, %c0_6] : memref<64x256xbf16, #tpu.memory_space<vmem>>, vector<64x256xbf16>
    tpu.vector_store %arg4[%c0_5, %c0_6], %7 {strides = array<i32>} : memref<64x256xbf16, #tpu.memory_space<vmem>>, vector<64x256xbf16>,
    return
  }
  func.func @transform_0(%arg0: i32) -> (i32, i32) {
    %c0_i32 = arith.constant 0 : i32
    %c0_i32_0 = arith.constant 0 : i32
    return %arg0, %c0_i32 : i32, i32
  }
  func.func @transform_1(%arg0: i32) -> (i32, i32) {
    %c0_i32 = arith.constant 0 : i32
    %c0_i32_0 = arith.constant 0 : i32
    %c0_i32_1 = arith.constant 0 : i32
    return %c0_i32, %c0_i32_0 : i32, i32
  }
  func.func @transform_2(%arg0: i32) -> (i32, i32) {
    %c0_i32 = arith.constant 0 : i32
    %c0_i32_0 = arith.constant 0 : i32
    %c0_i32_1 = arith.constant 0 : i32
    return %c0_i32, %c0_i32_0 : i32, i32
  }
  func.func @transform_3(%arg0: i32) -> (i32, i32) {
    %c0_i32 = arith.constant 0 : i32
    %c0_i32_0 = arith.constant 0 : i32
    return %arg0, %c0_i32 : i32, i32
  }
}

</mosaic_0001>

<bundles_post_ra>
// kernel: tpu_custom_call.1
= control target key start
LH: loop header
LB: loop body
LE: loop exit
PB: predicated region body
PF: predicated region fallthrough
CT: control target
= control target key end

     0   :  { %8 = vsyncpa [#allocation3], 0  ;;  %s736_s0 = inlined_call_operand.vmem [shape: f32[128,12], index: 0, kind: input, shape index: {}]   ;;  %s737_s1 = inlined_call_operand.vmem [shape: bf16[12,256], index: 1, kind: input, shape index: {}]   ;;  %s738_s2 = inlined_call_operand.vmem [shape: f32[1,256], index: 2, kind: input, shape index: {}]   ;;  %s739_s3 = inlined_call_operand.hbm [shape: bf16[128,256], index: 3, kind: output, shape index: {}]  }
   0x1   :  { %10 = vsyncpa [#allocation3 + $0x1], 0  ;;  %s606_s12 = smov 0   ;;  %s608_s13 = smov 0  }
   0x2   :  { %s610_s14 = smov 0   ;;  %s612_s15 = smov 0  }
   0x3 LB: > { %s627_s16 = sadd.s32 4294967295, %s580_s15   ;;  %s433_s17 = sadd.s32 4294967294, %s580_s15   ;;  %s580_s15 = sphi %s612_s15, %s745_s15   ;;  %s576_s14 = sphi %s610_s14, %s744_s14   ;;  %s572_s13 = sphi %s608_s13, %s743_s13   ;;  %s568_s12 = sphi %s606_s12, %s742_s12  }
   0x4   : > { %s631_s18 = sadd.s32 1, %s580_s15   ;;  %s91_s19 = sadd.s32 1, %s576_s14 }
   0x5   : > { %s88_s20 = ssub.s32 %s580_s15, %s631_s18  ;;  %p101_p0 = scmp.ne.s32.totalorder %s576_s14, %s572_s13 }
   0x6   : > { %p89_p1 = scmp.eq.s32.totalorder %s88_s20, 0  ;;  %p102_p2 = scmp.eq.s32.totalorder %s627_s16, 1 }
   0x7   : > { %p107_p3 = scmp.ne.s32.totalorder %s572_s13, %s568_s12  ;;  %p108_p4 = scmp.eq.s32.totalorder %s433_s17, 1 }
   0x8   : > { %s642_s21 = scalar_select %p89_p1, %s576_s14, %s91_s19  }
   0x9   : > { %p644_p5 = por %p102_p2, %p101_p0  ;;  %p648_p6 = por %p108_p4, %p107_p3 }
   0xa   : > { %p436_p7 = scmp.ge.s32.totalorder %s580_s15, 1  ;;  %p141_p8 = scmp.lt.s32.totalorder %s580_s15, 3 }
   0xc   : > { %p142_p9 = pnand %p436_p7, %p141_p8 }
   0xd   : > { %v515_v0 = vld [vmem:[%s737_s1 + $0x4] ss:$8 sps:$4 sm:$0x3f] (!%p142_p9)   ;;  %vm220_vm0 = vcmask (!%p142_p9), 1045504   ;;  %s438_s28 = sshll.u32 (!%p142_p9), %s627_s16, 3  ;;  %v582_v3 = vmov (!%p142_p9), 0   ;;  %v189_v16 = vlaneseq (!%p142_p9) }
   0xe   : > { %145 = sbr.rel (%p142_p9) target bundleno = 270 (0x10e), region = 32  ;;  %v517_v1 = vld [vmem:[%s737_s1] ss:$8 sps:$4 sm:$0x3f] (!%p142_p9)   ;;  %442 = vmatprep.subr.msk.bf16.mxu0 (!%p142_p9), %vm220_vm0, %v515_v0  ;;  %471 = vmatprep.subr.msk.bf16.mxu1 (!%p142_p9), %vm220_vm0, %v515_v0  ;;  %p166_p10 = scmp.lt.s32.totalorder (!%p142_p9), %s438_s28, 15  ;;  %vm207_vm1 = vcmask (!%p142_p9), 97280  }
   0xf   : > { %v222_v2 = vsel (!%p142_p9), %vm220_vm0, %v517_v1, 0  ;;  %259 = vmatprep.mubr.bf16.mxu0 (!%p142_p9), %v582_v3  ;;  %279 = vmatprep.mubr.bf16.mxu1 (!%p142_p9), %v582_v3  ;;  %v190_v17 = vshrl.u32 (!%p142_p9), %v189_v16, 7  ;;  %v187_v19 = vld [vmem:[%s738_s2] sm:$0x3] (!%p142_p9)  ;;  %s162_s8 = sand.u32 (!%p142_p9), 1, %s572_s13   ;;  %s470_s11 = sshll.u32 (!%p142_p9), %s627_s16, 10 }
  0x10   : > { %228 = vmatpush1.bf16.msra.mxu0 (!%p142_p9), %v222_v2  ;;  %472 = vmatpush1.bf16.msra.mxu1 (!%p142_p9), %v222_v2  ;;  %s437_s9 = sshll.u32 (!%p142_p9), %s162_s8, 6  ;;  %s686_s24 = scalar_lea.hbm (!%p142_p9), %s739_s3, %s470_s11 }
  0x11   : > { %v191_v18 = vsub.s32 (!%p142_p9), 0, %v190_v17  ;;  %v195_v20 = vsub.s32 (!%p142_p9), 1, %v190_v17  ;;  %s674_s10 = scalar_lea.vmem (!%p142_p9), [#allocation2], %s437_s9  ;;  %s695_s16 = scalar_lea.sflag (!%p142_p9), [#allocation3], %s162_s8 }
  0x12   : > { %s371_s17 = sshll.u32 (!%p142_p9), %s674_s10, 4  ;;  %s583_s26 = smov (!%p142_p9), [#allocation2]   ;;  %s688_s17 = int_to_ptr.vmem [resolvable:$true] %s371_s17 }
  0x13   : > { %v192_v21 = vrot.slane (!%p142_p9), %v187_v19, %v191_v18  ;;  %v196_v22 = vrot.slane (!%p142_p9), %v187_v19, %v195_v20  ;;  %s518_s25 = scalar_lea.vmem (!%p142_p9), %s688_s17, 1024  ;;  %s522_s27 = sshll.u32 (!%p142_p9), %s583_s26, 4  ;;  %s523_s27 = int_to_ptr.vmem [resolvable:$false] %s522_s27 }
  0x14   : > { %p519_p11 = scmp.ne.s32.totalorder (!%p142_p9), %s688_s17, %s518_s25  ;;  %p525_p0 = scmp.lt.s32.totalorder (!%p142_p9), %s688_s17, %s523_s27 }
  0x15   : > { %s747_s28 = smov (!%p166_p10, %s438_s28), 15 }
  0x16   : > { %s439_s29 = sshll.u32 %s747_s28, 3  ;;  %p520_p12 = pnand %p519_p11, %p644_p5 }
  0x17   : > { %s169_s5 = scalar_lea.vmem %s736_s0, %s439_s29  ;;  %s524_s28 = scalar_lea.vmem %s523_s27, 2048 }
  0x18   : > { %v173_v4 = vld [vmem:[%s169_s5] sm:$0xff]  ;;  %v174_v5 = vld [vmem:[%s169_s5 + $0x8] sm:$0xff]  ;;  %v175_v10 = vld [vmem:[%s169_s5 + $0x10] sm:$0xff]  ;;  %p521_p13 = pneg %p520_p12  ;;  %p526_p1 = scmp.lt.s32.totalorder %s524_s28, %s518_s25 }
  0x19   : > { %v177_v6 = vld [vmem:[%s169_s5 + $0x20] sm:$0xff]  ;;  %v181_v7 = vpack.c.bf16 %v174_v5, %v173_v4  ;;  %v178_v8 = vld [vmem:[%s169_s5 + $0x28] sm:$0xff]  ;;  %v176_v11 = vld [vmem:[%s169_s5 + $0x18] sm:$0xff] }
  0x1a   : > { %v183_v9 = vpack.c.bf16 %v178_v8, %v177_v6  ;;  %v179_v12 = vld [vmem:[%s169_s5 + $0x30] sm:$0xff]  ;;  %v180_v13 = vld [vmem:[%s169_s5 + $0x38] sm:$0xff]  ;;  %v182_v14 = vpack.c.bf16 %v176_v11, %v175_v10  ;;  %p527_p2 = por %p526_p1, %p525_p0 }
  0x1b   : > { %443 = vmatmul.mubr.msk.bf16.vlgmr.msra.gmra.mrb[0].mxu0 %vm207_vm1, %v181_v7  ;;  %v184_v15 = vpack.c.bf16 %v180_v13, %v179_v12 }
  0x1c   : > { %445 = vmatmul.mubr.msk.bf16.vlgmr.msra.gmra.mrb[0].mxu1 %vm207_vm1, %v183_v9  ;;  %269 = vmatprep.mubr.bf16.mxu0 %v582_v3  ;;  %p528_p3 = pnand %p527_p2, %p521_p13 }
  0x1d   : > { %289 = vmatprep.mubr.bf16.mxu1 %v582_v3 }
  0x23   : > { %444 = vmatmul.mubr.msk.bf16.gmra.mrb[4].mxu0 %vm207_vm1, %v182_v14 }
  0x24   : > { %446 = vmatmul.mubr.msk.bf16.gmra.mrb[4].mxu1 %vm207_vm1, %v184_v15 }
  0xee   : > { %v261_v23 = vpop.f32.mrb[0].mxu0 }
  0xef   : > { %v262_v24 = vadd.f32 %v261_v23, %v192_v21  ;;  %v281_v25 = vpop.f32.mrb[0].mxu1  ;;  %v263_v26 = vpop.f32.mrb[1].mxu0 }
  0xf0   : > { %v282_v27 = vadd.f32 %v281_v25, %v192_v21  ;;  %v264_v28 = vadd.f32 %v263_v26, %v196_v22  ;;  %v283_v29 = vpop.f32.mrb[1].mxu1  ;;  %v265_v30 = vpop.f32.mrb[2].mxu0 }
  0xf1   : > { %v284_v31 = vadd.f32 %v283_v29, %v196_v22  ;;  %v266_v32 = vadd.f32 %v265_v30, %v192_v21  ;;  %v285_v33 = vpop.f32.mrb[2].mxu1  ;;  %v267_v34 = vpop.f32.mrb[3].mxu0 }
  0xf2   : > { %v461_v35 = vpack.c.bf16 %v264_v28, %v262_v24  ;;  %v286_v36 = vadd.f32 %v285_v33, %v192_v21  ;;  %v268_v37 = vadd.f32 %v267_v34, %v196_v22  ;;  %v287_v38 = vpop.f32.mrb[3].mxu1 }
  0xf3   : > { %v465_v39 = vpack.c.bf16 %v284_v31, %v282_v27  ;;  %v288_v40 = vadd.f32 %v287_v38, %v196_v22 }
  0xf4   : > { %348 = vst [vmem:[%s674_s10] sm:$0xff] %v461_v35  ;;  %v462_v41 = vpack.c.bf16 %v268_v37, %v266_v32 }
  0xf5   : > { %352 = vst [vmem:[%s674_s10 + $0x20] sm:$0xff] %v465_v39  ;;  %v466_v42 = vpack.c.bf16 %v288_v40, %v286_v36 }
  0xf6   : > { %349 = vst [vmem:[%s674_s10 + $0x8] sm:$0xff] %v462_v41  ;;  %v271_v43 = vpop.f32.mrb[4].mxu0 }
  0xf7   : > { %353 = vst [vmem:[%s674_s10 + $0x28] sm:$0xff] %v466_v42  ;;  %v272_v44 = vadd.f32 %v271_v43, %v192_v21  ;;  %v291_v45 = vpop.f32.mrb[4].mxu1  ;;  %v273_v46 = vpop.f32.mrb[5].mxu0 }
  0xf8   : > { %v292_v47 = vadd.f32 %v291_v45, %v192_v21  ;;  %v274_v48 = vadd.f32 %v273_v46, %v196_v22  ;;  %v293_v49 = vpop.f32.mrb[5].mxu1  ;;  %v275_v50 = vpop.f32.mrb[6].mxu0 }
  0xf9   : > { %v294_v51 = vadd.f32 %v293_v49, %v196_v22  ;;  %v276_v52 = vadd.f32 %v275_v50, %v192_v21  ;;  %v295_v53 = vpop.f32.mrb[6].mxu1  ;;  %v277_v54 = vpop.f32.mrb[7].mxu0 }
  0xfa   : > { %v463_v55 = vpack.c.bf16 %v274_v48, %v272_v44  ;;  %v296_v56 = vadd.f32 %v295_v53, %v192_v21  ;;  %v278_v57 = vadd.f32 %v277_v54, %v196_v22  ;;  %v297_v58 = vpop.f32.mrb[7].mxu1 }
  0xfb   : > { %v467_v59 = vpack.c.bf16 %v294_v51, %v292_v47  ;;  %v298_v60 = vadd.f32 %v297_v58, %v196_v22 }
  0xfc   : > { %350 = vst [vmem:[%s674_s10 + $0x10] sm:$0xff] %v463_v55  ;;  %v464_v61 = vpack.c.bf16 %v278_v57, %v276_v52 }
  0xfd   : > { %354 = vst [vmem:[%s674_s10 + $0x30] sm:$0xff] %v467_v59  ;;  %v468_v62 = vpack.c.bf16 %v298_v60, %v296_v56 }
  0xfe   : > { %351 = vst [vmem:[%s674_s10 + $0x18] sm:$0xff] %v464_v61 }
  0xff   : > { %355 = vst [vmem:[%s674_s10 + $0x38] sm:$0xff] %v468_v62 }
 0x100   : > { %531 = shalt.err (!%p528_p3)
}
 0x101   : > { %s532_s29 = scalar_lea.hbm %s686_s24, 1024  ;;  %s536_s5 = scalar_lea.hbm %s739_s3, 2048 }
 0x102   : > { %p533_p4 = scmp.ne.s32.totalorder %s686_s24, %s532_s29  ;;  %p537_p9 = scmp.lt.u32.totalorder %s686_s24, %s739_s3 }
 0x103   : > { %p538_p10 = scmp.lt.u32.totalorder %s536_s5, %s532_s29  ;;  %p540_p12 = scmp.lt.u32.totalorder %s532_s29, %s686_s24 }
 0x104   : > { %p534_p7 = pnand %p533_p4, %p644_p5 }
 0x105   : > { %p539_p11 = por %p538_p10, %p537_p9 }
 0x106   : > { %p535_p8 = pneg %p534_p7 }
 0x107   : > { %p541_p13 = por %p540_p12, %p539_p11 }
 0x109   : > { %p542_p0 = pnand %p541_p13, %p535_p8 }
 0x10b   : > { %545 = shalt.err (!%p542_p0)
}
 0x10c   : > { %s584_s8 = smov 128   ;;  %s585_s9 = smov 8  }
 0x10d   : > { %473 = dma.vmem_to_hbm [thread:$0]  (%p644_p5), %s688_s17, 1024, %s686_s24, %s695_s16, %s584_s8, %s584_s8, %s585_s9  }
 0x10e PF: > { %p479_p1 = scmp.ge.s32.totalorder %s580_s15, 2  ;;  %s386_s10 = sand.u32 1, %s568_s12  }
 0x10f   : > { %s387_s11 = scalar_lea.sflag [#allocation3], %s386_s10 }
 0x110   : > { %p476_p2 = pnand %p479_p1, %p648_p6 }
 0x112   : > { %563 = dma.done.wait (!%p476_p2), %s387_s11, 1024  }
 0x113   : > { %565 = vsyncadd (!%p476_p2), %s387_s11, 4294966272  ;;  %p13_p3 = scmp.ge.s32.totalorder %s631_s18, 4   ;;  %s742_s12 = smov %s572_s13 }
 0x114   : > { %s743_s13 = smov %s576_s14  ;;  %s744_s14 = smov %s642_s21 }
 0x115   : > { %s745_s15 = smov %s631_s18  ;;  %15 = sbr.rel (!%p13_p3) target bundleno = 3 (0x3), region = 67 }
 0x11c   :  { %392 = vsyncpa [#allocation3], 1 }
 0x11d   :  { %394 = vsyncpa [#allocation3 + $0x1], 1 }

</bundles_post_ra>
